<compile_context>
chip_gen: v7x
topology: tpu7x:2x2x1
jax: 0.10.0
libtpu: 0.0.40
codegen_flags: <defaults>
</compile_context>

<pallas_src>
import functools

import jax
import jax.numpy as jnp
from jax import lax
from jax.experimental import pallas as pl
from jax.experimental.pallas import tpu as pltpu

_LANES = 128
_ACC_ROWS = 256                 # fixed accumulator: 256 x 128 f32 = 128 KiB
_ROW_ALIGN = 256                # block rows multiple of 256 (covers f32/bf16/int8 packing
                                # and guarantees _ACC_ROWS divides tm)
_TARGET_BLOCK_BYTES = 8 << 20   # ~8 MiB of input per grid step


def _round_up(x, m):
    return ((x + m - 1) // m) * m


def _pick_tiling(rows, itemsize):
    """Pick (tm, nblocks, nc, bpc) for a (rows, 128) slab.

    Always keeps nblocks == cdiv(rows, tm) (no phantom / fully-OOB blocks) and
    prefers an even nblocks so the reduction splits 2-way across TensorCores.
    """
    tm_target = max(
        _ROW_ALIGN,
        (_TARGET_BLOCK_BYTES // (_LANES * itemsize)) // _ROW_ALIGN * _ROW_ALIGN,
    )
    if rows <= tm_target:
        # Whole slab in a single block (block shape == full array dims: always legal).
        return rows, 1, 1, 1

    tm = min(tm_target, _round_up(pl.cdiv(rows, 2), _ROW_ALIGN))
    nblocks = pl.cdiv(rows, tm)
    if nblocks % 2:
        # Nudge tm down a notch so the block count becomes even -> clean 2-TC split.
        alt = _round_up(pl.cdiv(rows, nblocks + 1), _ROW_ALIGN)
        if alt >= _ROW_ALIGN and pl.cdiv(rows, alt) % 2 == 0:
            tm = alt
            nblocks = pl.cdiv(rows, tm)

    nc = 2 if nblocks % 2 == 0 else 1
    return tm, nblocks, nc, nblocks // nc


def _wgan_sum_kernel(x_ref, o_ref, acc_ref, *, tm, bpc, nblocks, rows, acc_rows, ragged):
    """Per-core partial sum of a (rows, 128) slab, streamed in (tm, 128) tiles."""
    c = pl.program_id(0)   # outer "parallel" axis (core split on megacore parts)
    i = pl.program_id(1)   # streaming "arbitrary" (reduction) axis

    if nblocks == 1:
        # Single block: no cross-step accumulation needed at all.
        o_ref[...] = jnp.sum(x_ref[...].astype(jnp.float32)).reshape(1, 1, 1)
        return

    @pl.when(i == 0)
    def _():
        acc_ref[...] = jnp.zeros_like(acc_ref)

    blk = c * bpc + i

    def _accumulate(mask_tail):
        x = x_ref[...]
        if x.dtype != jnp.float32:
            x = x.astype(jnp.float32)
        if mask_tail:
            # Zero the rows of the (partial) last block that hang past `rows`.
            grow = lax.broadcasted_iota(jnp.int32, (tm, _LANES), 0) + blk * tm
            x = jnp.where(grow < rows, x, 0.0)
        # Fold the (tm, 128) tile into the small fixed accumulator with pure
        # element-wise adds: ~1 VALU add per input element, tiny acc RMW traffic,
        # no cross-lane work in the steady state.
        acc_ref[...] += x.reshape(-1, acc_rows, _LANES).sum(axis=0)

    if ragged:
        # Only the global last block overhangs: gate the mask onto that single
        # grid step and keep an unmasked fast path for everything else.
        @pl.when(blk == nblocks - 1)
        def _():
            _accumulate(mask_tail=True)

        @pl.when(blk != nblocks - 1)
        def _():
            _accumulate(mask_tail=False)
    else:
        _accumulate(mask_tail=False)

    @pl.when(i == bpc - 1)
    def _():
        # One cross-lane/sublane reduce per core, at the very end.
        o_ref[...] = jnp.sum(acc_ref[...]).reshape(1, 1, 1)


def wgan_gp_loss(prediction, is_real: bool, penalty: float = 10.0):
    """Pallas implementation of WganGpLoss.forward(prediction, is_real).

    `penalty` is kept for API parity with the PyTorch module but is unused by
    the forward pass (it only matters for cal_gradient_penalty).
    `is_real` must be a static Python bool (mirrors the torch `if is_real`).
    Returns a float32 scalar (accumulation is f32).
    """
    del penalty
    if not isinstance(is_real, (bool, int)):
        raise TypeError("is_real must be a static Python bool, not a traced value")

    n = prediction.size
    if n == 0:
        # torch .mean() of an empty tensor is NaN.
        return jnp.array(jnp.nan, dtype=jnp.float32)

    sign = -1.0 if is_real else 1.0
    flat = prediction.reshape(-1)
    itemsize = jnp.dtype(prediction.dtype).itemsize

    rows = n // _LANES              # number of complete 128-lane rows
    rem = n - rows * _LANES         # <128 leftover elements (rare)

    tail = None
    if rem:
        # Tiny (<128 element) lane remainder: cheaper to fold in with a plain
        # jnp.sum than to pad/copy the whole tensor in HBM.
        tail = jnp.sum(flat[rows * _LANES:].astype(jnp.float32))

    if rows == 0:
        total = tail
    else:
        main = flat if rem == 0 else flat[: rows * _LANES]
        x2d = main.reshape(rows, _LANES)

        tm, nblocks, nc, bpc = _pick_tiling(rows, itemsize)
        ragged = (rows % tm) != 0

        kernel = functools.partial(
            _wgan_sum_kernel,
            tm=tm, bpc=bpc, nblocks=nblocks, rows=rows,
            acc_rows=_ACC_ROWS, ragged=ragged,
        )

        block_bytes = tm * _LANES * itemsize
        # Double-buffered input + accumulator + slack; explicit so bigger blocks
        # don't trip the (16 MiB on v5e) default scoped-VMEM limit.
        vmem_limit = max(2 * block_bytes + (4 << 20), 16 << 20)

        cost = pl.CostEstimate(
            flops=rows * _LANES,                      # ~1 add per element
            transcendentals=0,
            bytes_accessed=rows * _LANES * itemsize + nc * 4,
        )

        partials = pl.pallas_call(
            kernel,
            out_shape=jax.ShapeDtypeStruct((nc, 1, 1), jnp.float32),
            grid_spec=pltpu.PrefetchScalarGridSpec(
                num_scalar_prefetch=0,
                grid=(nc, bpc),
                in_specs=[pl.BlockSpec((tm, _LANES), lambda c, i: (c * bpc + i, 0))],
                out_specs=pl.BlockSpec((1, 1, 1), lambda c, i: (c, 0, 0)),
                scratch_shapes=[pltpu.VMEM((_ACC_ROWS, _LANES), jnp.float32)],
            ),
            compiler_params=pltpu.CompilerParams(
                dimension_semantics=("parallel", "arbitrary"),
                vmem_limit_bytes=int(vmem_limit),
            ),
            cost_estimate=cost,
        )(x2d)

        total = jnp.sum(partials)
        if tail is not None:
            total = total + tail

    return (sign / float(n)) * total


# TODO(synk): cal_gradient_penalty requires calling an external discriminator D and
# differentiating through it (torch.autograd.grad); it is not a self-contained
# forward-pass hot path and is therefore not implemented as a Pallas kernel here.


if __name__ == "__main__":
    key = jax.random.PRNGKey(0)

    # 1) Discriminator-style prediction map, NCHW-like shape (single-block path).
    prediction = jax.random.normal(key, (2, 4, 16, 16), dtype=jnp.float32)
    loss_real = wgan_gp_loss(prediction, is_real=True)
    loss_fake = wgan_gp_loss(prediction, is_real=False)
    jax.block_until_ready((loss_real, loss_fake))
    ref = jnp.mean(prediction)
    assert jnp.allclose(loss_real, -ref, atol=1e-6, rtol=1e-6), (loss_real, -ref)
    assert jnp.allclose(loss_fake, ref, atol=1e-6, rtol=1e-6), (loss_fake, ref)

    # 2) Ragged element count (not a multiple of 128) exercises the no-padding
    #    lane-tail path.
    pred2 = jax.random.normal(jax.random.PRNGKey(0), (2, 3, 17, 19), dtype=jnp.float32)
    loss2 = wgan_gp_loss(pred2, is_real=False)
    jax.block_until_ready(loss2)
    ref2 = jnp.mean(pred2)
    assert jnp.allclose(loss2, ref2, atol=1e-5, rtol=1e-5), (loss2, ref2)

    # 3) Larger tensor exercises the multi-block streaming path: 2-way core
    #    split (nc=2, bpc=2), big 8 MiB blocks, and the pl.when-gated ragged
    #    row mask on the final block.
    pred3 = jax.random.normal(jax.random.PRNGKey(1), (4, 4, 640, 640), dtype=jnp.float32)
    loss3 = wgan_gp_loss(pred3, is_real=True)
    jax.block_until_ready(loss3)
    ref3 = -jnp.mean(pred3)
    assert jnp.allclose(loss3, ref3, atol=1e-5, rtol=1e-3), (loss3, ref3)

    print("KERNEL_OK")
</pallas_src>

<mosaic_0001>
module attributes {stable_mosaic.version = 11 : i64} {
  func.func @_wgan_sum_kernel(%arg0: i32, %arg1: i32, %arg2: memref<16x128xf32, #tpu.memory_space<vmem>>, %arg3: memref<1x1x1xf32, #tpu.memory_space<vmem>>, %arg4: memref<256x128xf32, #tpu.memory_space<vmem>>) attributes {dimension_semantics = [#tpu.dimension_semantics<parallel>, #tpu.dimension_semantics<arbitrary>], iteration_bounds = array<i64: 1, 1>, scalar_prefetch = 0 : i64, scratch_operands = 1 : i64, tpu.core_type = #tpu.core_type<tc>, window_params = [{transform_indices = @transform_0, window_bounds = array<i64: 16, 128>}, {transform_indices = @transform_1, window_bounds = array<i64: 1, 1, 1>}]} {
    %c0 = arith.constant 0 : index
    %c0_0 = arith.constant 0 : index
    %0 = vector.load %arg2[%c0, %c0_0] : memref<16x128xf32, #tpu.memory_space<vmem>>, vector<16x128xf32>
    %1 = vector.shape_cast %0 : vector<16x128xf32> to vector<1x16x128xf32>
    %cst = arith.constant dense<0.000000e+00> : vector<1xf32>
    %2 = vector.multi_reduction <add>, %1, %cst [1, 2] : vector<1x16x128xf32> to vector<1xf32>
    %3 = vector.shape_cast %2 : vector<1xf32> to vector<1x1x1xf32>
    %4 = vector.extract %3[0, 0, 0] : f32 from vector<1x1x1xf32>
    %5 = vector.broadcast %4 : f32 to vector<1x1x1xf32>
    %c0_1 = arith.constant 0 : index
    %c0_2 = arith.constant 0 : index
    %c0_3 = arith.constant 0 : index
    %6 = vector.load %arg3[%c0_1, %c0_2, %c0_3] : memref<1x1x1xf32, #tpu.memory_space<vmem>>, vector<1x1x1xf32>
    tpu.vector_store %arg3[%c0_1, %c0_2, %c0_3], %5 {strides = array<i32>} : memref<1x1x1xf32, #tpu.memory_space<vmem>>, vector<1x1x1xf32>,
    return
  }
  func.func @transform_0(%arg0: i32, %arg1: i32) -> (i32, i32) {
    %c1_i32 = arith.constant 1 : i32
    %0 = arith.muli %arg0, %c1_i32 : i32
    %1 = arith.addi %0, %arg1 : i32
    %c0_i32 = arith.constant 0 : i32
    %c0_i32_0 = arith.constant 0 : i32
    return %1, %c0_i32 : i32, i32
  }
  func.func @transform_1(%arg0: i32, %arg1: i32) -> (i32, i32, i32) {
    %c0_i32 = arith.constant 0 : i32
    %c0_i32_0 = arith.constant 0 : i32
    %c0_i32_1 = arith.constant 0 : i32
    return %arg0, %c0_i32, %c0_i32_0 : i32, i32, i32
  }
}

</mosaic_0001>

<bundles_post_ra>
// kernel: tpu_custom_call.1
= control target key start
LH: loop header
LB: loop body
LE: loop exit
PB: predicated region body
PF: predicated region fallthrough
CT: control target
= control target key end

     0   :  { %6 = vsyncpa [#allocation4], 0  ;;  %s151_s0 = inlined_call_operand.hbm [shape: f32[16,128], index: 0, kind: input, shape index: {}]   ;;  %s152_s1 = inlined_call_operand.hbm [shape: f32[1,1,1], index: 1, kind: output, shape index: {}]  }
   0x1   :  { %7 = vsyncpa [#allocation5], 0  ;;  %s113_s6 = smov [#allocation3]   ;;  %s65_s10 = scalar_lea.hbm %s151_s0, 256 }
   0x2   :  { %s17_s7 = sshll.u32 %s113_s6, 4  ;;  %p66_p0 = scmp.ne.s32.totalorder %s151_s0, %s65_s10  ;;  %s18_s7 = int_to_ptr.vmem [resolvable:$true] %s17_s7 }
   0x3   :  { %p69_p1 = scmp.lt.u32.totalorder %s65_s10, %s151_s0 }
   0x5   :  { %p71_p2 = pnand %p69_p1, %p66_p0 }
   0x7   :  { %74 = shalt.err (!%p71_p2)
}
   0x8   :  { %s75_s15 = scalar_lea.vmem %s18_s7, 256  ;;  %p80_p4 = scmp.lt.s32.totalorder %s18_s7, %s18_s7 }
   0x9   :  { %p76_p3 = scmp.ne.s32.totalorder %s18_s7, %s75_s15  ;;  %p81_p5 = scmp.lt.s32.totalorder %s75_s15, %s75_s15 }
   0xb   :  { %p82_p6 = por %p81_p5, %p80_p4 }
   0xd   :  { %p83_p7 = pnand %p82_p6, %p76_p3 }
   0xf   :  { %86 = shalt.err (!%p83_p7)
}
  0x10   :  { %s114_s16 = smov 128   ;;  %s115_s17 = smov 8  }
  0x11   :  { %23 = dma.hbm_to_vmem [thread:$0]  %s151_s0, 256, %s18_s7, [#allocation4], %s114_s16, %s114_s16, %s115_s17  }
  0x12   :  { %109 = dma.done.wait [#allocation4], 256  }
  0x13   :  { %110 = vsyncadd [#allocation4], 4294967040  ;;  %v29_v0 = vld [vmem:[#allocation3] sm:$0xff]  ;;  %v30_v1 = vld [vmem:[#allocation3 + $0x8] sm:$0xff]  ;;  %s116_s20 = smov [#allocation6]   ;;  %vm42_vm0 = vcmask 0  }
  0x14   :  { %v31_v2 = vadd.f32 %v30_v1, %v29_v0  ;;  %s50_s21 = sshll.u32 %s116_s20, 4  ;;  %s51_s21 = int_to_ptr.vmem [resolvable:$true] %s50_s21 }
  0x15   :  { %s87_s0 = scalar_lea.vmem %s51_s21, 16  ;;  %s91_s23 = scalar_lea.vmem %s51_s21, 32 }
  0x16   :  { %32 = vadd.xlane.f32.xlu0 %v31_v2  ;;  %p88_p8 = scmp.ne.s32.totalorder %s51_s21, %s87_s0  ;;  %p92_p9 = scmp.lt.s32.totalorder %s51_s21, %s51_s21 }
  0x17   :  { %p93_p10 = scmp.lt.s32.totalorder %s91_s23, %s87_s0 }
  0x19   :  { %p94_p11 = por %p93_p10, %p92_p9 }
  0x1b   :  { %p95_p12 = pnand %p94_p11, %p88_p8 }
  0xa3   :  { %v33_v3 = vpop.xlane.xlu0 %32 }
  0xa4   :  { %v34_v4 = vrot.slane %v33_v3, 4 }
  0xa6   :  { %v35_v5 = vadd.f32 %v34_v4, %v33_v3 }
  0xa8   :  { %v36_v6 = vrot.slane %v35_v5, 2 }
  0xaa   :  { %v37_v7 = vadd.f32 %v36_v6, %v35_v5 }
  0xac   :  { %v38_v8 = vrot.slane %v37_v7, 1 }
  0xae   :  { %v39_v9 = vadd.f32 %v38_v8, %v37_v7 }
  0xb0   :  { %59 = vpush %v39_v9 }
  0xe1   :  { %s60_s22 = spop %59 }
  0xe2   :  { %v41_v10 = vstv %s60_s22 }
  0xe3   :  { %43 = vst.msk [vmem:[#allocation6] sm:$0x1] %vm42_vm0, %v41_v10 }
  0xe4   :  { %98 = shalt.err (!%p95_p12)
}
  0xe5   :  { %s99_s26 = scalar_lea.hbm %s152_s1, 16 }
  0xe6   :  { %p100_p13 = scmp.ne.s32.totalorder %s152_s1, %s99_s26  ;;  %p103_p0 = scmp.lt.u32.totalorder %s99_s26, %s152_s1 }
  0xe8   :  { %p105_p1 = pnand %p103_p0, %p100_p13 }
  0xea   :  { %108 = shalt.err (!%p105_p1)
}
  0xeb   :  { %53 = dma.vmem_to_hbm [thread:$0]  %s51_s21, 16, %s152_s1, [#allocation5]  }
  0xec   :  { %111 = dma.done.wait [#allocation5], 16  }
  0xed   :  { %112 = vsyncadd [#allocation5], 4294967280 }
  0xee   :  { %57 = vsyncpa [#allocation4], 1 }
  0xef   :  { %58 = vsyncpa [#allocation5], 1 }

</bundles_post_ra>
